<compile_context>
chip_gen: v7x
topology: tpu7x:2x2x1
jax: 0.10.0
libtpu: 0.0.40
codegen_flags: <defaults>
</compile_context>

<pallas_src>
import math
import functools
import numpy as np

import jax
import jax.numpy as jnp
from jax import lax
from jax.experimental import pallas as pl
from jax.experimental.pallas import tpu as pltpu

LANE = 128            # feature lanes; all feature dims zero-padded to this
ROW_TILE = 512        # row tile for fused MLPs (256 KiB f32 block)
SQD_TILE = 256        # row/col tile for the pairwise-distance kernel
NODE_TILE = 256       # node tile for the EdgeConv scatter-add accumulator
EDGE_TILE = 256       # edge tile for the scatter-add reduction axis
SEG_TILE = 8          # clusters handled per segment-max output block
SEG_NODE_TILE = 512   # node tile for the segment-max reduction axis


def _round_up(x, m):
    return ((x + m - 1) // m) * m


def _blocking(n, tile, align=8):
    """Pad n and pick a block size: single full block if small, else `tile`."""
    npad = _round_up(max(n, 1), align)
    if npad <= tile:
        return npad, npad
    return _round_up(npad, tile), tile


def _vmem_limit_bytes():
    # Generation-aware scoped-VMEM budget (v7x has 64 MiB physical vs 128 MiB
    # on v5e/v6e); all blocks below are small, this only sets headroom.
    cap = 128 * 1024 * 1024
    try:
        info_fn = getattr(pltpu, "get_tpu_info", None)
        if info_fn is not None:
            cap = int(getattr(info_fn(), "vmem_capacity_bytes", cap))
    except Exception:
        pass
    return max(32 * 1024 * 1024, min(3 * cap // 4, 96 * 1024 * 1024))


VMEM_LIMIT = _vmem_limit_bytes()


def _cparams(sem):
    return pltpu.CompilerParams(dimension_semantics=sem,
                                vmem_limit_bytes=VMEM_LIMIT)


# ------------------------------ Pallas kernels ------------------------------

def _elu(y):
    # ELU(alpha=1).  TODO(synk): switch the negative branch to jnp.expm1 once
    # confirmed in the Mosaic elementwise lowering set.
    return jnp.where(y > 0.0, y, jnp.exp(jnp.minimum(y, 0.0)) - 1.0)


def _fused_mlp_kernel(*refs, num_layers, last_act):
    x_ref = refs[0]
    o_ref = refs[1 + 2 * num_layers]
    y = x_ref[...]                                   # (TM, 128) f32
    for l in range(num_layers):
        w = refs[1 + 2 * l][...]                     # (128, 128) bf16, VMEM-resident
        b = refs[2 + 2 * l][...]                     # (1, 128) f32
        y = jnp.dot(y.astype(jnp.bfloat16), w, preferred_element_type=jnp.float32)
        y = y + b
        if last_act or l < num_layers - 1:
            y = _elu(y)
    o_ref[...] = y                                   # lane-dense (TM, 128) store


def fused_mlp(x, layers, last_act):
    """x: (R, 128) f32 with lanes >= fan_in zeroed.  layers: [(w_bf16, b_f32)]."""
    r = x.shape[0]
    rp, tile = _blocking(r, ROW_TILE)
    xp = jnp.pad(x, ((0, rp - r), (0, 0)))
    in_specs = [pl.BlockSpec((tile, LANE), lambda i: (i, 0))]
    ops = [xp]
    for (w, b) in layers:
        in_specs.append(pl.BlockSpec((LANE, LANE), lambda i: (0, 0)))
        in_specs.append(pl.BlockSpec((1, LANE), lambda i: (0, 0)))
        ops.extend([w, b])
    out = pl.pallas_call(
        functools.partial(_fused_mlp_kernel, num_layers=len(layers),
                          last_act=last_act),
        out_shape=jax.ShapeDtypeStruct((rp, LANE), jnp.float32),
        grid=(rp // tile,),
        in_specs=in_specs,
        out_specs=pl.BlockSpec((tile, LANE), lambda i: (i, 0)),
        compiler_params=_cparams(("parallel",)),
    )(*ops)
    return out[:r]


def _sqdist_kernel(xr_ref, xc_ref, nr_ref, nc_ref, br_ref, bc_ref, o_ref):
    # f32 MXU cross term (no bf16 cancellation for near neighbours).
    g = lax.dot_general(xr_ref[...], xc_ref[...],
                        dimension_numbers=(((1,), (1,)), ((), ())),
                        preferred_element_type=jnp.float32)
    d2 = jnp.maximum(nr_ref[...] + nc_ref[...] - 2.0 * g, 0.0)
    same = br_ref[...] == bc_ref[...]                # (TM,1) vs (1,TN) -> (TM,TN)
    o_ref[...] = jnp.where(same, d2, jnp.float32(1e30))


def masked_pairwise_sqdist(points, batch_np):
    """Tiled (N,N) squared distances; cross-graph / padded pairs get 1e30."""
    # TODO(synk): fuse a streaming per-row top-k (column axis 'arbitrary',
    # running k-best in VMEM scratch) to avoid materializing the full (N,N)
    # matrix at large N; at these sizes the dense matrix + lax.top_k is fine.
    n = points.shape[0]
    npad, tile = _blocking(n, SQD_TILE, align=128)
    xp = jnp.pad(points, ((0, npad - n), (0, 0)))
    sq = jnp.sum(xp * xp, axis=1, keepdims=True)     # row norms, computed once
    bcol = np.full((npad, 1), -1, np.int32)
    bcol[:n, 0] = batch_np
    brow = bcol.reshape(1, npad)
    nt = npad // tile
    return pl.pallas_call(
        _sqdist_kernel,
        out_shape=jax.ShapeDtypeStruct((npad, npad), jnp.float32),
        grid=(nt, nt),
        in_specs=[pl.BlockSpec((tile, LANE), lambda i, j: (i, 0)),
                  pl.BlockSpec((tile, LANE), lambda i, j: (j, 0)),
                  pl.BlockSpec((tile, 1), lambda i, j: (i, 0)),
                  pl.BlockSpec((1, tile), lambda i, j: (0, j)),
                  pl.BlockSpec((tile, 1), lambda i, j: (i, 0)),
                  pl.BlockSpec((1, tile), lambda i, j: (0, j))],
        out_specs=pl.BlockSpec((tile, tile), lambda i, j: (i, j)),
        compiler_params=_cparams(("parallel", "parallel")),
    )(xp, xp, sq, sq.reshape(1, npad), jnp.asarray(bcol), jnp.asarray(brow))


def _scatter_add_kernel(dst_ref, feat_ref, o_ref):
    @pl.when(pl.program_id(1) == 0)
    def _init():
        o_ref[...] = jnp.zeros_like(o_ref)
    dst = dst_ref[...]                               # (1, TE) int32 (pad = -1)
    nt = o_ref.shape[0]
    base = pl.program_id(0) * nt
    node_ids = base + lax.broadcasted_iota(jnp.int32, (nt, dst.shape[1]), 0)
    onehot = (node_ids == dst).astype(jnp.float32)   # exact 0/1
    # f32 one-hot matmul == exact f32 scatter-add (1.0 * x is exact).
    o_ref[...] += jnp.dot(onehot, feat_ref[...], preferred_element_type=jnp.float32)


def scatter_add(dst_np, feat, num_nodes):
    """EdgeConv aggr='add': out[i] = sum over edges with dst==i of feat[e]."""
    # TODO(synk): sorted-dst + scalar-prefetched node windows would cut the
    # O(N*E) one-hot compares to O(E*window) at very large N; the node-tiled
    # accumulator below bounds VMEM and gives a 'parallel' axis on every gen.
    e = feat.shape[0]
    ep, etile = _blocking(e, EDGE_TILE)
    npad, ntile = _blocking(num_nodes, NODE_TILE)
    dst_pad = np.full((1, ep), -1, np.int32)
    dst_pad[0, :e] = dst_np
    feat_pad = jnp.pad(feat, ((0, ep - e), (0, 0)))
    out = pl.pallas_call(
        _scatter_add_kernel,
        out_shape=jax.ShapeDtypeStruct((npad, LANE), jnp.float32),
        grid=(npad // ntile, ep // etile),
        in_specs=[pl.BlockSpec((1, etile), lambda i, e_: (0, e_)),
                  pl.BlockSpec((etile, LANE), lambda i, e_: (e_, 0))],
        out_specs=pl.BlockSpec((ntile, LANE), lambda i, e_: (i, 0)),  # accumulator
        compiler_params=_cparams(("parallel", "arbitrary")),
    )(jnp.asarray(dst_pad), feat_pad)
    return out[:num_nodes]


def _segment_max_kernel(cid_ref, x_ref, o_ref):
    neg = jnp.float32(-3.0e38)

    @pl.when(pl.program_id(1) == 0)
    def _init():
        o_ref[...] = jnp.full_like(o_ref, neg)

    c0 = pl.program_id(0) * SEG_TILE
    x = x_ref[...]                                   # (node_tile, 128) f32
    cid = cid_ref[...]                               # (node_tile, 1) int32 (pad = -1)
    cur = o_ref[...]
    rows = []
    for c in range(SEG_TILE):                        # fixed small unroll (8)
        m = cid == (c0 + c)
        rows.append(jnp.max(jnp.where(m, x, neg), axis=0, keepdims=True))
    o_ref[...] = jnp.maximum(cur, jnp.concatenate(rows, axis=0))


def segment_max(x, seg_np, num_segments):
    n = x.shape[0]
    npad, ntile = _blocking(n, SEG_NODE_TILE)
    cpad = _round_up(num_segments, SEG_TILE)
    cid = np.full((npad, 1), -1, np.int32)
    cid[:n, 0] = seg_np
    xp = jnp.pad(x, ((0, npad - n), (0, 0)))
    out = pl.pallas_call(
        _segment_max_kernel,
        out_shape=jax.ShapeDtypeStruct((cpad, LANE), jnp.float32),
        grid=(cpad // SEG_TILE, npad // ntile),
        in_specs=[pl.BlockSpec((ntile, 1), lambda c, n_: (n_, 0)),
                  pl.BlockSpec((ntile, LANE), lambda c, n_: (n_, 0))],
        out_specs=pl.BlockSpec((SEG_TILE, LANE), lambda c, n_: (c, 0)),
        compiler_params=_cparams(("parallel", "arbitrary")),
    )(jnp.asarray(cid), xp)
    return out[:num_segments]


# --------------------------- host-side graph glue ---------------------------

def _build_undirected_edges(nbr_idx, nbr_d2, n):
    """kNN picks -> undirected, coalesced (src, dst) edge list, sorted by src."""
    k = nbr_idx.shape[1]
    u = np.repeat(np.arange(n, dtype=np.int64), k)
    v = nbr_idx.reshape(-1).astype(np.int64)
    d = nbr_d2.reshape(-1)
    valid = d < 1e29                                 # drop cross-graph / padded picks
    u, v = u[valid], v[valid]
    codes = np.unique(np.concatenate([u * n + v, v * n + u]))
    return codes // n, codes % n


def _graclus(src, dst, weight, n):
    """Greedy heavy-edge matching (graclus semantics), vectorized per node."""
    # TODO(synk): torch_cluster.graclus_cluster visits nodes in a random order;
    # a deterministic 0..N-1 order is used here (pooled values differ bit-wise).
    cluster = -np.ones(n, dtype=np.int64)
    order = np.argsort(src, kind="stable")
    s, d, w = src[order], dst[order], weight[order]
    ptr = np.searchsorted(s, np.arange(n + 1))
    for u in range(n):
        if cluster[u] >= 0:
            continue
        lo, hi = int(ptr[u]), int(ptr[u + 1])
        cand = d[lo:hi]
        ok = (cand != u) & (cluster[cand] < 0)
        if ok.any():
            cw = w[lo:hi]
            v = int(cand[ok][int(np.argmax(cw[ok]))])
            c = min(u, v)
            cluster[u] = c
            cluster[v] = c
        else:
            cluster[u] = u
    return cluster


def _consecutive_cluster(cluster):
    uniq, inv = np.unique(cluster, return_inverse=True)
    perm = np.empty(len(uniq), dtype=np.int64)
    perm[inv] = np.arange(len(cluster))              # one representative per cluster
    return inv.astype(np.int64), perm


# --------------------------------- the model ---------------------------------

def _init_linear(key, fan_in, fan_out):
    k1, k2 = jax.random.split(key)
    bound = 1.0 / math.sqrt(fan_in)
    w = jax.random.uniform(k1, (fan_in, fan_out), jnp.float32, -bound, bound)
    b = jax.random.uniform(k2, (1, fan_out), jnp.float32, -bound, bound)
    return w, b


def _pad_layer(w, b):
    fi, fo = w.shape
    wp = jnp.zeros((LANE, LANE), jnp.float32).at[:fi, :fo].set(w).astype(jnp.bfloat16)
    bp = jnp.zeros((1, LANE), jnp.float32).at[:, :fo].set(b)
    return wp, bp


class DRNPallas:
    def __init__(self, input_dim, hidden_dim=64, output_dim=6, graph_features=2,
                 k=16, aggr="add", loop=True, pool="max", agg_layers=6,
                 mp_layers=3, in_layers=4, out_layers=2, seed=1):
        assert aggr == "add" and pool == "max" and loop      # module defaults
        assert input_dim <= LANE and 2 * hidden_dim <= LANE
        assert hidden_dim + graph_features <= LANE and output_dim <= LANE
        self.hidden_dim = hidden_dim
        self.graph_features = graph_features
        self.k = k
        self.output_dim = output_dim

        key = jax.random.PRNGKey(seed)

        def nxt():
            nonlocal key
            key, sub = jax.random.split(key)
            return sub

        # inputnet: Linear(input,h)+ELU, then (in_layers-1) x (Linear(h,h)+ELU)
        self.in_params = []
        dims = [input_dim] + [hidden_dim] * in_layers
        for a, b_ in zip(dims[:-1], dims[1:]):
            self.in_params.append(_pad_layer(*_init_linear(nxt(), a, b_)))

        # agg layers: EdgeConv MLPs: (mp_layers-1) x (2h->2h,ELU) + (2h->h,ELU)
        self.mp_params = []
        for _ in range(agg_layers):
            layers = []
            for _ in range(mp_layers - 1):
                layers.append(_pad_layer(*_init_linear(nxt(), 2 * hidden_dim,
                                                       2 * hidden_dim)))
            layers.append(_pad_layer(*_init_linear(nxt(), 2 * hidden_dim, hidden_dim)))
            self.mp_params.append(layers)

        # output net: (out_layers-1) x (Linear(h+gf,h+gf)+ELU) + Linear(h+gf,out)
        self.out_params = []
        d = hidden_dim + graph_features
        for _ in range(out_layers - 1):
            self.out_params.append(_pad_layer(*_init_linear(nxt(), d, d)))
        self.out_params.append(_pad_layer(*_init_linear(nxt(), d, output_dim)))

    def forward(self, x, graph_x, batch):
        if x.shape[0] == 0:
            return jnp.empty((0, self.output_dim), jnp.float32)

        h = self.hidden_dim
        gf = self.graph_features
        graph_x = jnp.reshape(graph_x, (-1, gf)).astype(jnp.float32)

        # ---- inputnet: one fused pallas_call, weights VMEM-resident ----
        in_dim = x.shape[1]
        points = jnp.pad(x.astype(jnp.float32), ((0, 0), (0, LANE - in_dim)))
        points = fused_mlp(points, self.in_params, last_act=True)

        batch_np = np.asarray(batch).astype(np.int64)

        for mp in self.mp_params:
            n = points.shape[0]

            # ---- kNN graph (loop=True): distances + top-k on device ----
            d2 = masked_pairwise_sqdist(points, batch_np)
            kk = min(self.k, n)
            neg_d, nbr = lax.top_k(-d2[:n, :], kk)
            nbr_h, negd_h = jax.device_get((nbr, neg_d))     # single host sync
            src, dst = _build_undirected_edges(nbr_h, -negd_h, n)

            src_j = jnp.asarray(src, dtype=jnp.int32)
            dst_j = jnp.asarray(dst, dtype=jnp.int32)

            # ---- EdgeConv: out[i] = sum_{j in N(i)} nn([x_i, x_j - x_i]) ----
            # TODO(synk): gather + MLP + scatter could be fused into one kernel
            # with scalar-prefetched edge indices to kill the (E,128) feat
            # round-trip; kept separate (tiled) here for robustness.
            x_i = points[dst_j][:, :h]
            x_j = points[src_j][:, :h]
            parts = [x_i, x_j - x_i]
            if 2 * h < LANE:
                parts.append(jnp.zeros((x_i.shape[0], LANE - 2 * h), jnp.float32))
            feat = jnp.concatenate(parts, axis=1)
            feat = fused_mlp(feat, mp, last_act=True)        # fused MLP chain
            points = scatter_add(dst, feat, n)               # aggr='add'

            # ---- normalized_cut_2d weights + graclus (host, one sync) ----
            ph = np.asarray(points[:, :h]).astype(np.float64)
            diff = ph[src] - ph[dst]
            edge_attr = np.sqrt(np.maximum((diff * diff).sum(axis=1), 0.0))
            deg = np.bincount(dst, minlength=n).astype(np.float64)
            weight = edge_attr * (1.0 / deg[src] + 1.0 / deg[dst])
            cluster = _graclus(src, dst, weight, n)
            cluster, perm = _consecutive_cluster(cluster)
            num_c = int(cluster.max()) + 1

            # ---- max pooling over clusters (aggr_pool / aggr_pool_x) ----
            points = segment_max(points, cluster, num_c)
            batch_np = batch_np[perm]

        # ---- global max pool over graphs ----
        num_graphs = int(batch_np.max()) + 1
        points = segment_max(points, batch_np, num_graphs)

        # ---- concat graph features (into padded lanes) + output net ----
        points = points.at[:, h:h + gf].set(graph_x)
        points = fused_mlp(points, self.out_params, last_act=False)
        points = points[:, :self.output_dim]
        if self.output_dim == 1:                             # torch .squeeze(-1)
            points = jnp.squeeze(points, axis=-1)
        return points


# ----------------------------------- main -----------------------------------

if __name__ == "__main__":
    key = jax.random.PRNGKey(0)
    num_graphs, nodes_per_graph, input_dim, graph_features = 2, 16, 4, 2

    kx, kg = jax.random.split(key)
    x = jax.random.normal(kx, (num_graphs * nodes_per_graph, input_dim), jnp.float32)
    graph_x = jax.random.normal(kg, (num_graphs * graph_features,), jnp.float32)
    batch = jnp.repeat(jnp.arange(num_graphs, dtype=jnp.int32), nodes_per_graph)

    model = DRNPallas(input_dim=input_dim, hidden_dim=32, output_dim=6,
                      graph_features=graph_features, k=4, aggr="add", loop=True,
                      pool="max", agg_layers=3, mp_layers=2, in_layers=2,
                      out_layers=2, seed=1)

    out = model.forward(x, graph_x, batch)
    out = jax.block_until_ready(out)
    assert out.shape == (num_graphs, 6) and out.dtype == jnp.float32
    assert bool(jnp.all(jnp.isfinite(out)))
    print("KERNEL_OK")
</pallas_src>

<mosaic_0001>
module attributes {stable_mosaic.version = 11 : i64} {
  func.func @_fused_mlp_kernel(%arg0: i32, %arg1: memref<32x128xf32, #tpu.memory_space<vmem>>, %arg2: memref<128x128xbf16, #tpu.memory_space<vmem>>, %arg3: memref<1x128xf32, #tpu.memory_space<vmem>>, %arg4: memref<128x128xbf16, #tpu.memory_space<vmem>>, %arg5: memref<1x128xf32, #tpu.memory_space<vmem>>, %arg6: memref<32x128xf32, #tpu.memory_space<vmem>>) attributes {dimension_semantics = [#tpu.dimension_semantics<parallel>], iteration_bounds = array<i64: 1>, scalar_prefetch = 0 : i64, scratch_operands = 0 : i64, tpu.core_type = #tpu.core_type<tc>, window_params = [{transform_indices = @transform_0, window_bounds = array<i64: 32, 128>}, {pipeline_mode = #tpu.pipeline_mode<synchronous>, transform_indices = @transform_1, window_bounds = array<i64: 128, 128>}, {pipeline_mode = #tpu.pipeline_mode<synchronous>, transform_indices = @transform_2, window_bounds = array<i64: 1, 128>}, {pipeline_mode = #tpu.pipeline_mode<synchronous>, transform_indices = @transform_3, window_bounds = array<i64: 128, 128>}, {pipeline_mode = #tpu.pipeline_mode<synchronous>, transform_indices = @transform_4, window_bounds = array<i64: 1, 128>}, {transform_indices = @transform_5, window_bounds = array<i64: 32, 128>}]} {
    %c0 = arith.constant 0 : index
    %c0_0 = arith.constant 0 : index
    %0 = vector.load %arg1[%c0, %c0_0] : memref<32x128xf32, #tpu.memory_space<vmem>>, vector<32x128xf32>
    %c0_1 = arith.constant 0 : index
    %c0_2 = arith.constant 0 : index
    %1 = vector.load %arg2[%c0_1, %c0_2] : memref<128x128xbf16, #tpu.memory_space<vmem>>, vector<128x128xbf16>
    %c0_3 = arith.constant 0 : index
    %c0_4 = arith.constant 0 : index
    %2 = vector.load %arg3[%c0_3, %c0_4] : memref<1x128xf32, #tpu.memory_space<vmem>>, vector<1x128xf32>
    %3 = arith.truncf %0 : vector<32x128xf32> to vector<32x128xbf16>
    %cst = arith.constant dense<0.000000e+00> : vector<32x128xf32>
    %4 = tpu.matmul %3, %1, %cst {dimension_numbers = #tpu.dot_dimension_numbers<[1], [0], [0], [1], [0, 0, 1, 1], [], []>} : vector<32x128xbf16>, vector<128x128xbf16>, vector<32x128xf32> -> vector<32x128xf32>
    %5 = vector.broadcast %2 : vector<1x128xf32> to vector<32x128xf32>
    %6 = arith.addf %4, %5 : vector<32x128xf32>
    %cst_5 = arith.constant 0.000000e+00 : f32
    %7 = vector.broadcast %cst_5 : f32 to vector<32x128xf32>
    %8 = arith.cmpf ogt, %6, %7 : vector<32x128xf32>
    %cst_6 = arith.constant 0.000000e+00 : f32
    %9 = vector.broadcast %cst_6 : f32 to vector<32x128xf32>
    %10 = arith.minimumf %6, %9 : vector<32x128xf32>
    %11 = math.exp %10 : vector<32x128xf32>
    %cst_7 = arith.constant 1.000000e+00 : f32
    %12 = vector.broadcast %cst_7 : f32 to vector<32x128xf32>
    %13 = arith.subf %11, %12 : vector<32x128xf32>
    %14 = arith.select %8, %6, %13 : vector<32x128xi1>, vector<32x128xf32>
    %c0_8 = arith.constant 0 : index
    %c0_9 = arith.constant 0 : index
    %15 = vector.load %arg4[%c0_8, %c0_9] : memref<128x128xbf16, #tpu.memory_space<vmem>>, vector<128x128xbf16>
    %c0_10 = arith.constant 0 : index
    %c0_11 = arith.constant 0 : index
    %16 = vector.load %arg5[%c0_10, %c0_11] : memref<1x128xf32, #tpu.memory_space<vmem>>, vector<1x128xf32>
    %17 = arith.truncf %14 : vector<32x128xf32> to vector<32x128xbf16>
    %cst_12 = arith.constant dense<0.000000e+00> : vector<32x128xf32>
    %18 = tpu.matmul %17, %15, %cst_12 {dimension_numbers = #tpu.dot_dimension_numbers<[1], [0], [0], [1], [0, 0, 1, 1], [], []>} : vector<32x128xbf16>, vector<128x128xbf16>, vector<32x128xf32> -> vector<32x128xf32>
    %19 = vector.broadcast %16 : vector<1x128xf32> to vector<32x128xf32>
    %20 = arith.addf %18, %19 : vector<32x128xf32>
    %cst_13 = arith.constant 0.000000e+00 : f32
    %21 = vector.broadcast %cst_13 : f32 to vector<32x128xf32>
    %22 = arith.cmpf ogt, %20, %21 : vector<32x128xf32>
    %cst_14 = arith.constant 0.000000e+00 : f32
    %23 = vector.broadcast %cst_14 : f32 to vector<32x128xf32>
    %24 = arith.minimumf %20, %23 : vector<32x128xf32>
    %25 = math.exp %24 : vector<32x128xf32>
    %cst_15 = arith.constant 1.000000e+00 : f32
    %26 = vector.broadcast %cst_15 : f32 to vector<32x128xf32>
    %27 = arith.subf %25, %26 : vector<32x128xf32>
    %28 = arith.select %22, %20, %27 : vector<32x128xi1>, vector<32x128xf32>
    %c0_16 = arith.constant 0 : index
    %c0_17 = arith.constant 0 : index
    %29 = vector.load %arg6[%c0_16, %c0_17] : memref<32x128xf32, #tpu.memory_space<vmem>>, vector<32x128xf32>
    tpu.vector_store %arg6[%c0_16, %c0_17], %28 {strides = array<i32>} : memref<32x128xf32, #tpu.memory_space<vmem>>, vector<32x128xf32>,
    return
  }
  func.func @transform_0(%arg0: i32) -> (i32, i32) {
    %c0_i32 = arith.constant 0 : i32
    %c0_i32_0 = arith.constant 0 : i32
    return %arg0, %c0_i32 : i32, i32
  }
  func.func @transform_1(%arg0: i32) -> (i32, i32) {
    %c0_i32 = arith.constant 0 : i32
    %c0_i32_0 = arith.constant 0 : i32
    %c0_i32_1 = arith.constant 0 : i32
    return %c0_i32, %c0_i32_0 : i32, i32
  }
  func.func @transform_2(%arg0: i32) -> (i32, i32) {
    %c0_i32 = arith.constant 0 : i32
    %c0_i32_0 = arith.constant 0 : i32
    %c0_i32_1 = arith.constant 0 : i32
    return %c0_i32, %c0_i32_0 : i32, i32
  }
  func.func @transform_3(%arg0: i32) -> (i32, i32) {
    %c0_i32 = arith.constant 0 : i32
    %c0_i32_0 = arith.constant 0 : i32
    %c0_i32_1 = arith.constant 0 : i32
    return %c0_i32, %c0_i32_0 : i32, i32
  }
  func.func @transform_4(%arg0: i32) -> (i32, i32) {
    %c0_i32 = arith.constant 0 : i32
    %c0_i32_0 = arith.constant 0 : i32
    %c0_i32_1 = arith.constant 0 : i32
    return %c0_i32, %c0_i32_0 : i32, i32
  }
  func.func @transform_5(%arg0: i32) -> (i32, i32) {
    %c0_i32 = arith.constant 0 : i32
    %c0_i32_0 = arith.constant 0 : i32
    return %arg0, %c0_i32 : i32, i32
  }
}

</mosaic_0001>

<bundles_post_ra>
// kernel: tpu_custom_call.1
= control target key start
LH: loop header
LB: loop body
LE: loop exit
PB: predicated region body
PF: predicated region fallthrough
CT: control target
= control target key end

     0   :  { %10 = vsyncpa [#allocation3], 0  ;;  %s791_s0 = inlined_call_operand.hbm [shape: f32[32,128], index: 0, kind: input, shape index: {}]   ;;  %s792_s1 = inlined_call_operand.hbm [shape: bf16[128,128], index: 1, kind: input, shape index: {}]   ;;  %s793_s2 = inlined_call_operand.hbm [shape: f32[1,128], index: 2, kind: input, shape index: {}]   ;;  %s794_s3 = inlined_call_operand.hbm [shape: bf16[128,128], index: 3, kind: input, shape index: {}]   ;;  %s795_s4 = inlined_call_operand.hbm [shape: f32[1,128], index: 4, kind: input, shape index: {}]   ;;  %s796_s5 = inlined_call_operand.hbm [shape: f32[32,128], index: 5, kind: output, shape index: {}]  }
   0x1   :  { %11 = vsyncpa [#allocation6], 0 }
   0x2   :  { %12 = vsyncpa [#allocation9], 0 }
   0x3   :  { %13 = vsyncpa [#allocation4], 0  ;;  %s673_s18 = smov [#allocation5]   ;;  %s533_s22 = scalar_lea.hbm %s792_s1, 1024 }
   0x4   :  { %s31_s19 = sshll.u32 %s673_s18, 4  ;;  %p534_p0 = scmp.ne.s32.totalorder %s792_s1, %s533_s22  ;;  %s32_s19 = int_to_ptr.vmem [resolvable:$true] %s31_s19 }
   0x5   :  { %p537_p1 = scmp.lt.u32.totalorder %s533_s22, %s792_s1 }
   0x7   :  { %p539_p2 = pnand %p537_p1, %p534_p0 }
   0x9   :  { %542 = shalt.err (!%p539_p2)
}
   0xa   :  { %s543_s27 = scalar_lea.vmem %s32_s19, 1024  ;;  %p548_p4 = scmp.lt.s32.totalorder %s32_s19, %s32_s19 }
   0xb   :  { %p544_p3 = scmp.ne.s32.totalorder %s32_s19, %s543_s27  ;;  %p549_p5 = scmp.lt.s32.totalorder %s543_s27, %s543_s27 }
   0xd   :  { %p550_p6 = por %p549_p5, %p548_p4 }
   0xf   :  { %p551_p7 = pnand %p550_p6, %p544_p3 }
  0x11   :  { %554 = shalt.err (!%p551_p7)
}
  0x12   :  { %s674_s28 = smov 64   ;;  %s675_s29 = smov 4  }
  0x13   :  { %37 = dma.hbm_to_vmem [thread:$0]  %s792_s1, 1024, %s32_s19, [#allocation6], %s674_s28, %s674_s28, %s675_s29  }
  0x14   :  { %s676_s7 = smov [#allocation8]   ;;  %s677_s9 = smov [#allocation2]  }
  0x15   :  { %s53_s8 = sshll.u32 %s676_s7, 4  ;;  %s19_s10 = sshll.u32 %s677_s9, 4  ;;  %s54_s8 = int_to_ptr.vmem [resolvable:$true] %s53_s8  ;;  %s20_s10 = int_to_ptr.vmem [resolvable:$true] %s19_s10 }
  0x16   :  { %s555_s13 = scalar_lea.hbm %s794_s3, 1024 }
  0x17   :  { %p556_p8 = scmp.ne.s32.totalorder %s794_s3, %s555_s13  ;;  %p559_p9 = scmp.lt.u32.totalorder %s555_s13, %s794_s3 }
  0x19   :  { %p561_p10 = pnand %p559_p9, %p556_p8 }
  0x1b   :  { %564 = shalt.err (!%p561_p10)
}
  0x1c   :  { %s565_s1 = scalar_lea.vmem %s54_s8, 1024  ;;  %p570_p12 = scmp.lt.s32.totalorder %s54_s8, %s54_s8 }
  0x1d   :  { %p566_p11 = scmp.ne.s32.totalorder %s54_s8, %s565_s1  ;;  %p571_p13 = scmp.lt.s32.totalorder %s565_s1, %s565_s1 }
  0x1f   :  { %p572_p0 = por %p571_p13, %p570_p12 }
  0x21   :  { %p573_p1 = pnand %p572_p0, %p566_p11 }
  0x23   :  { %576 = shalt.err (!%p573_p1)
}
  0x24   :  { %59 = dma.hbm_to_vmem [thread:$0]  %s794_s3, 1024, %s54_s8, [#allocation9], %s674_s28, %s674_s28, %s675_s29  }
  0x25   :  { %s577_s22 = scalar_lea.hbm %s791_s0, 512 }
  0x26   :  { %p578_p2 = scmp.ne.s32.totalorder %s791_s0, %s577_s22  ;;  %p581_p3 = scmp.lt.u32.totalorder %s577_s22, %s791_s0 }
  0x28   :  { %p583_p4 = pnand %p581_p3, %p578_p2 }
  0x2a   :  { %586 = shalt.err (!%p583_p4)
}
  0x2b   :  { %s587_s27 = scalar_lea.vmem %s20_s10, 512  ;;  %p592_p6 = scmp.lt.s32.totalorder %s20_s10, %s20_s10 }
  0x2c   :  { %p588_p5 = scmp.ne.s32.totalorder %s20_s10, %s587_s27  ;;  %p593_p7 = scmp.lt.s32.totalorder %s587_s27, %s587_s27 }
  0x2e   :  { %p594_p8 = por %p593_p7, %p592_p6 }
  0x30   :  { %p595_p9 = pnand %p594_p8, %p588_p5 }
  0x32   :  { %598 = shalt.err (!%p595_p9)
}
  0x33   :  { %s678_s3 = smov 128   ;;  %s679_s28 = smov 8  }
  0x34   :  { %25 = dma.hbm_to_vmem [thread:$0]  %s791_s0, 512, %s20_s10, [#allocation3], %s678_s3, %s678_s3, %s679_s28  }
  0x35   :  { %s680_s6 = smov [#allocation7]   ;;  %s681_s8 = smov [#allocation10]  }
  0x36   :  { %s44_s7 = sshll.u32 %s680_s6, 4  ;;  %s66_s9 = sshll.u32 %s681_s8, 4  ;;  %s45_s7 = int_to_ptr.vmem [resolvable:$true] %s44_s7  ;;  %s67_s9 = int_to_ptr.vmem [resolvable:$true] %s66_s9 }
  0x37   :  { %s599_s13 = scalar_lea.hbm %s793_s2, 16 }
  0x38   :  { %p600_p10 = scmp.ne.s32.totalorder %s793_s2, %s599_s13  ;;  %p603_p11 = scmp.lt.u32.totalorder %s599_s13, %s793_s2 }
  0x3a   :  { %p605_p12 = pnand %p603_p11, %p600_p10 }
  0x3c   :  { %608 = shalt.err (!%p605_p12)
}
  0x3d   :  { %s609_s0 = scalar_lea.vmem %s45_s7, 16  ;;  %s613_s10 = scalar_lea.vmem %s45_s7, 32 }
  0x3e   :  { %p610_p13 = scmp.ne.s32.totalorder %s45_s7, %s609_s0  ;;  %p614_p0 = scmp.lt.s32.totalorder %s45_s7, %s45_s7 }
  0x3f   :  { %p615_p1 = scmp.lt.s32.totalorder %s613_s10, %s609_s0 }
  0x41   :  { %p616_p2 = por %p615_p1, %p614_p0 }
  0x43   :  { %p617_p3 = pnand %p616_p2, %p610_p13 }
  0x45   :  { %620 = shalt.err (!%p617_p3)
}
  0x46   :  { %47 = dma.hbm_to_vmem [thread:$0]  %s793_s2, 16, %s45_s7, [#allocation6]  }
  0x47   :  { %s621_s21 = scalar_lea.hbm %s795_s4, 16 }
  0x48   :  { %p622_p4 = scmp.ne.s32.totalorder %s795_s4, %s621_s21  ;;  %p625_p5 = scmp.lt.u32.totalorder %s621_s21, %s795_s4 }
  0x4a   :  { %p627_p6 = pnand %p625_p5, %p622_p4 }
  0x4c   :  { %630 = shalt.err (!%p627_p6)
}
  0x4d   :  { %s631_s26 = scalar_lea.vmem %s67_s9, 16  ;;  %s635_s27 = scalar_lea.vmem %s67_s9, 32 }
  0x4e   :  { %p632_p7 = scmp.ne.s32.totalorder %s67_s9, %s631_s26  ;;  %p636_p8 = scmp.lt.s32.totalorder %s67_s9, %s67_s9 }
  0x4f   :  { %p637_p9 = scmp.lt.s32.totalorder %s635_s27, %s631_s26 }
  0x51   :  { %p638_p10 = por %p637_p9, %p636_p8 }
  0x53   :  { %p639_p11 = pnand %p638_p10, %p632_p7 }
  0x55   :  { %642 = shalt.err (!%p639_p11)
}
  0x56   :  { %69 = dma.hbm_to_vmem [thread:$0]  %s795_s4, 16, %s67_s9, [#allocation9]  }
  0x57   :  { %665 = dma.done.wait [#allocation3], 512  }
  0x58   :  { %666 = vsyncadd [#allocation3], 4294966784 }
  0x59   :  { %667 = dma.done.wait [#allocation6], 1040  }
  0x5a   :  { %668 = vsyncadd [#allocation6], 4294966256 }
  0x5b   :  { %669 = dma.done.wait [#allocation9], 1040  }
  0x5c   :  { %670 = vsyncadd [#allocation9], 4294966256  ;;  %v501_v0 = vld [vmem:[#allocation5] sm:$0xff]   ;;  %v502_v1 = vld [vmem:[#allocation5 + $0x8] sm:$0xff]   ;;  %s682_s4 = smov [#allocation11]  }
  0x5d   :  { %451 = vmatprep.subr.bf16.mxu0 %v501_v0  ;;  %v503_v2 = vld [vmem:[#allocation5 + $0x10] sm:$0xff]   ;;  %v504_v3 = vld [vmem:[#allocation5 + $0x18] sm:$0xff]   ;;  %v86_v4 = vld [vmem:[#allocation2] sm:$0xff]  ;;  %s391_s30 = sshll.u32 %s682_s4, 4  ;;  %s392_s30 = int_to_ptr.vmem [resolvable:$true] %s391_s30 }
  0x5e   :  { %452 = vmatpush3.bf16.msra.mxu0 %v501_v0  ;;  %v87_v5 = vld [vmem:[#allocation2 + $0x8] sm:$0xff]  ;;  %v505_v7 = vld [vmem:[#allocation5 + $0x20] sm:$0xff]   ;;  %v507_v11 = vld [vmem:[#allocation5 + $0x30] sm:$0xff]   ;;  %s643_s6 = scalar_lea.vmem %s392_s30, 512  ;;  %p648_p13 = scmp.lt.s32.totalorder %s392_s30, %s392_s30 }
  0x5f   :  { %453 = vmatprep.subr.bf16.mxu0 %v502_v1  ;;  %v107_v6 = vpack.c.bf16 %v87_v5, %v86_v4  ;;  %v509_v8 = vld [vmem:[#allocation8] sm:$0xff]   ;;  %v510_v9 = vld [vmem:[#allocation8 + $0x8] sm:$0xff]   ;;  %v508_v12 = vld [vmem:[#allocation5 + $0x38] sm:$0xff]   ;;  %p644_p12 = scmp.ne.s32.totalorder %s392_s30, %s643_s6  ;;  %p649_p0 = scmp.lt.s32.totalorder %s643_s6, %s643_s6 }
  0x60   :  { %471 = vmatprep.subr.bf16.mxu1 %v509_v8  ;;  %v506_v10 = vld [vmem:[#allocation5 + $0x28] sm:$0xff]   ;;  %v88_v13 = vld [vmem:[#allocation2 + $0x10] sm:$0xff]  ;;  %v89_v14 = vld [vmem:[#allocation2 + $0x18] sm:$0xff] }
  0x61   :  { %467 = vmatprep.mubr.bf16.mxu0 %v107_v6  ;;  %472 = vmatpush3.bf16.msra.mxu1 %v509_v8  ;;  %v108_v15 = vpack.c.bf16 %v89_v14, %v88_v13  ;;  %v511_v16 = vld [vmem:[#allocation8 + $0x10] sm:$0xff]   ;;  %v512_v17 = vld [vmem:[#allocation8 + $0x18] sm:$0xff]   ;;  %v513_v18 = vld [vmem:[#allocation8 + $0x20] sm:$0xff]   ;;  %p650_p1 = por %p649_p0, %p648_p13 }
  0x62   :  { %454 = vmatpush3.bf16.msra.mxu0 %v502_v1  ;;  %473 = vmatprep.subr.bf16.mxu1 %v510_v9  ;;  %v514_v19 = vld [vmem:[#allocation8 + $0x28] sm:$0xff]   ;;  %v515_v20 = vld [vmem:[#allocation8 + $0x30] sm:$0xff]   ;;  %v516_v21 = vld [vmem:[#allocation8 + $0x38] sm:$0xff]  }
  0x63   :  { %455 = vmatprep.subr.bf16.mxu0 %v503_v2  ;;  %v405_v22 = vld [vmem:[#allocation7] ss:$0 sm:$0xff]  ;;  %v418_v53 = vld [vmem:[#allocation10] ss:$0 sm:$0xff]  ;;  %p651_p2 = pnand %p650_p1, %p644_p12 }
  0x65   :  { %474 = vmatpush3.bf16.msra.mxu1 %v510_v9 }
  0x66   :  { %456 = vmatpush3.bf16.msra.mxu0 %v503_v2  ;;  %475 = vmatprep.subr.bf16.mxu1 %v511_v16 }
  0x67   :  { %457 = vmatprep.subr.bf16.mxu0 %v504_v3 }
  0x69   :  { %476 = vmatpush3.bf16.msra.mxu1 %v511_v16 }
  0x6a   :  { %458 = vmatpush3.bf16.msra.mxu0 %v504_v3  ;;  %477 = vmatprep.subr.bf16.mxu1 %v512_v17 }
  0x6b   :  { %459 = vmatprep.subr.bf16.mxu0 %v505_v7 }
  0x6d   :  { %478 = vmatpush3.bf16.msra.mxu1 %v512_v17 }
  0x6e   :  { %460 = vmatpush3.bf16.msra.mxu0 %v505_v7  ;;  %479 = vmatprep.subr.bf16.mxu1 %v513_v18 }
  0x6f   :  { %461 = vmatprep.subr.bf16.mxu0 %v506_v10 }
  0x71   :  { %480 = vmatpush3.bf16.msra.mxu1 %v513_v18 }
  0x72   :  { %462 = vmatpush3.bf16.msra.mxu0 %v506_v10  ;;  %481 = vmatprep.subr.bf16.mxu1 %v514_v19 }
  0x73   :  { %463 = vmatprep.subr.bf16.mxu0 %v507_v11 }
  0x75   :  { %482 = vmatpush3.bf16.msra.mxu1 %v514_v19 }
  0x76   :  { %464 = vmatpush3.bf16.msra.mxu0 %v507_v11  ;;  %483 = vmatprep.subr.bf16.mxu1 %v515_v20 }
  0x77   :  { %465 = vmatprep.subr.bf16.mxu0 %v508_v12 }
  0x79   :  { %484 = vmatpush3.bf16.msra.mxu1 %v515_v20 }
  0x7a   :  { %466 = vmatpush3.bf16.msra.mxu0 %v508_v12  ;;  %485 = vmatprep.subr.bf16.mxu1 %v516_v21 }
  0x7d   :  { %468 = vmatmul.mubr.bf16.vlgmr.msra.gmra.mrb[0].mxu0 %v108_v15  ;;  %486 = vmatpush3.bf16.msra.mxu1 %v516_v21 }
 0x150   :  { %v469_v23 = vpop.f32.mrb[0].mxu0 }
 0x151   :  { %v206_v24 = vadd.f32 %v469_v23, %v405_v22  ;;  %v197_v25 = vpop.f32.mrb[1].mxu0 }
 0x152   :  { %v198_v26 = vadd.f32 %v405_v22, %v197_v25  ;;  %v470_v27 = vpop.f32.mrb[2].mxu0 }
 0x153   :  { %v218_v28 = vmin.f32 %v206_v24, 0.0  ;;  %v209_v29 = vadd.f32 %v470_v27, %v405_v22  ;;  %v200_v30 = vpop.f32.mrb[3].mxu0  ;;  %vm214_vm0 = vcmp.gt.f32.partialorder %v206_v24, 0.0 }
 0x154   :  { %v216_v31 = vmin.f32 %v198_v26, 0.0  ;;  %v201_v32 = vadd.f32 %v405_v22, %v200_v30  ;;  %vm212_vm2 = vcmp.gt.f32.partialorder %v198_v26, 0.0 }
 0x155   :  { %v224_v33 = vmul.f32 1.442695, %v218_v28  ;;  %v219_v34 = vmin.f32 %v209_v29, 0.0  ;;  %vm215_vm1 = vcmp.gt.f32.partialorder %v209_v29, 0.0 }
 0x156   :  { %v220_v35 = vmul.f32 1.442695, %v216_v31  ;;  %v217_v36 = vmin.f32 %v201_v32, 0.0  ;;  %vm213_vm3 = vcmp.gt.f32.partialorder %v201_v32, 0.0 }
 0x157   :  { %517 = vpow2.f32 %v224_v33  ;;  %v226_v37 = vmul.f32 1.442695, %v219_v34 }
 0x158   :  { %519 = vpow2.f32 %v220_v35  ;;  %v222_v38 = vmul.f32 1.442695, %v217_v36 }
 0x159   :  { %521 = vpow2.f32 %v226_v37 }
 0x15a   :  { %523 = vpow2.f32 %v222_v38 }
 0x161   :  { %v518_v39 = vpop.eup %517 }
 0x162   :  { %v520_v40 = vpop.eup %519  ;;  %v416_v41 = vadd.f32 -1.0, %v518_v39 }
 0x163   :  { %v522_v42 = vpop.eup %521  ;;  %v414_v43 = vadd.f32 -1.0, %v520_v40 }
 0x164   :  { %v524_v44 = vpop.eup %523  ;;  %v417_v45 = vadd.f32 -1.0, %v522_v42  ;;  %v234_v47 = vsel %vm214_vm0, %v206_v24, %v416_v41 }
 0x165   :  { %v415_v46 = vadd.f32 -1.0, %v524_v44  ;;  %v232_v49 = vsel %vm212_vm2, %v198_v26, %v414_v43 }
 0x166   :  { %v235_v48 = vsel %vm215_vm1, %v209_v29, %v417_v45 }
 0x167   :  { %v233_v50 = vsel %vm213_vm3, %v201_v32, %v415_v46  ;;  %v254_v51 = vpack.c.bf16 %v235_v48, %v234_v47 }
 0x168   :  { %v253_v52 = vpack.c.bf16 %v233_v50, %v232_v49 }
 0x16a   :  { %487 = vmatprep.mubr.bf16.mxu1 %v253_v52 }
 0x16b   :  { %488 = vmatmul.mubr.bf16.vlgmr.msra.gmra.mrb[0].mxu1 %v254_v51 }
 0x23e   :  { %v489_v54 = vpop.f32.mrb[0].mxu1 }
 0x23f   :  { %v352_v55 = vadd.f32 %v489_v54, %v418_v53  ;;  %v343_v56 = vpop.f32.mrb[1].mxu1 }
 0x240   :  { %v344_v57 = vadd.f32 %v418_v53, %v343_v56  ;;  %v490_v58 = vpop.f32.mrb[2].mxu1 }
 0x241   :  { %v364_v59 = vmin.f32 %v352_v55, 0.0  ;;  %v355_v60 = vadd.f32 %v490_v58, %v418_v53  ;;  %v346_v61 = vpop.f32.mrb[3].mxu1  ;;  %vm360_vm4 = vcmp.gt.f32.partialorder %v352_v55, 0.0 }
 0x242   :  { %v362_v62 = vmin.f32 %v344_v57, 0.0  ;;  %v347_v63 = vadd.f32 %v418_v53, %v346_v61  ;;  %vm358_vm5 = vcmp.gt.f32.partialorder %v344_v57, 0.0 }
 0x243   :  { %v370_v0 = vmul.f32 1.442695, %v364_v59  ;;  %v365_v1 = vmin.f32 %v355_v60, 0.0  ;;  %vm361_vm6 = vcmp.gt.f32.partialorder %v355_v60, 0.0 }
 0x244   :  { %v366_v2 = vmul.f32 1.442695, %v362_v62  ;;  %v363_v3 = vmin.f32 %v347_v63, 0.0  ;;  %vm359_vm7 = vcmp.gt.f32.partialorder %v347_v63, 0.0 }
 0x245   :  { %525 = vpow2.f32 %v370_v0  ;;  %v372_v4 = vmul.f32 1.442695, %v365_v1 }
 0x246   :  { %527 = vpow2.f32 %v366_v2  ;;  %v368_v5 = vmul.f32 1.442695, %v363_v3 }
 0x247   :  { %529 = vpow2.f32 %v372_v4 }
 0x248   :  { %531 = vpow2.f32 %v368_v5 }
 0x24f   :  { %v526_v6 = vpop.eup %525 }
 0x250   :  { %v528_v7 = vpop.eup %527  ;;  %v429_v8 = vadd.f32 -1.0, %v526_v6 }
 0x251   :  { %v530_v9 = vpop.eup %529  ;;  %v427_v10 = vadd.f32 -1.0, %v528_v7 }
 0x252   :  { %v532_v11 = vpop.eup %531  ;;  %v380_v12 = vsel %vm360_vm4, %v352_v55, %v429_v8  ;;  %v430_v13 = vadd.f32 -1.0, %v530_v9 }
 0x253   :  { %384 = vst [vmem:[#allocation11 + $0x10] sm:$0xff] %v380_v12  ;;  %v378_v14 = vsel %vm358_vm5, %v344_v57, %v427_v10  ;;  %v428_v15 = vadd.f32 -1.0, %v532_v11 }
 0x254   :  { %382 = vst [vmem:[#allocation11] sm:$0xff] %v378_v14  ;;  %v381_v16 = vsel %vm361_vm6, %v355_v60, %v430_v13 }
 0x255   :  { %385 = vst [vmem:[#allocation11 + $0x18] sm:$0xff] %v381_v16  ;;  %v379_v17 = vsel %vm359_vm7, %v347_v63, %v428_v15 }
 0x256   :  { %383 = vst [vmem:[#allocation11 + $0x8] sm:$0xff] %v379_v17 }
 0x257   :  { %654 = shalt.err (!%p651_p2)
}
 0x258   :  { %s655_s9 = scalar_lea.hbm %s796_s5, 512 }
 0x259   :  { %p656_p3 = scmp.ne.s32.totalorder %s796_s5, %s655_s9  ;;  %p659_p4 = scmp.lt.u32.totalorder %s655_s9, %s796_s5 }
 0x25b   :  { %p661_p5 = pnand %p659_p4, %p656_p3 }
 0x25d   :  { %664 = shalt.err (!%p661_p5)
}
 0x25e   :  { %397 = dma.vmem_to_hbm [thread:$0]  %s392_s30, 512, %s796_s5, [#allocation4], %s678_s3, %s678_s3, %s679_s28  }
 0x25f   :  { %671 = dma.done.wait [#allocation4], 512  }
 0x260   :  { %672 = vsyncadd [#allocation4], 4294966784 }
 0x261   :  { %401 = vsyncpa [#allocation3], 1 }
 0x262   :  { %402 = vsyncpa [#allocation6], 1 }
 0x263   :  { %403 = vsyncpa [#allocation9], 1 }
 0x264   :  { %404 = vsyncpa [#allocation4], 1 }

</bundles_post_ra>
